<compile_context>
chip_gen: v7x
topology: tpu7x:2x2x1
jax: 0.10.0
libtpu: 0.0.40
codegen_flags: <defaults>
</compile_context>

<pallas_src>
import jax
import jax.numpy as jnp
from jax.experimental import pallas as pl
from jax.experimental.pallas import tpu as pltpu

BUF_SHAPE = (10, 3)
FLAT = BUF_SHAPE[0] * BUF_SHAPE[1]  # 30


def _buffer_loop_kernel(count_ref, buf_ref, upd_ref, out_ref):
    # count_ref: (1,) int32 in SMEM
    # buf_ref, upd_ref, out_ref: full (1, 30) f32 arrays in VMEM
    #
    # `count` iterations of buf += upd  ==  buf + count * upd.
    # Clamp at 0 so count <= 0 matches the loop's "run zero iterations".
    n = jnp.maximum(count_ref[0], 0).astype(jnp.float32)
    out_ref[...] = buf_ref[...] + n * upd_ref[...]


def _forward_impl(count_arr, buf_init, update_tensor):
    buf_flat = buf_init.reshape(1, FLAT)
    upd_flat = update_tensor.reshape(1, FLAT)

    out_flat = pl.pallas_call(
        _buffer_loop_kernel,
        out_shape=jax.ShapeDtypeStruct((1, FLAT), jnp.float32),
        in_specs=[
            pl.BlockSpec(memory_space=pltpu.MemorySpace.SMEM),   # count
            pl.BlockSpec(memory_space=pltpu.MemorySpace.VMEM),   # buf
            pl.BlockSpec(memory_space=pltpu.MemorySpace.VMEM),   # update
        ],
        out_specs=pl.BlockSpec(memory_space=pltpu.MemorySpace.VMEM),
        # buf (input index 1) aliases the single output -> in-place buffer update.
        input_output_aliases={1: 0},
    )(count_arr, buf_flat, upd_flat)

    return out_flat.reshape(BUF_SHAPE)


_forward_jit = jax.jit(_forward_impl)


def buffer_pop_loop_forward(count, buf_init, update_tensor):
    """count: python int / int32 scalar; buf_init, update_tensor: (10, 3) f32."""
    count_arr = jnp.asarray(count, dtype=jnp.int32).reshape((1,))
    return _forward_jit(count_arr, buf_init, update_tensor)


class BufferPopLoopModel:
    """JAX mirror of the PyTorch module (buffer initialized to zeros)."""

    def __init__(self):
        self.buf = jnp.zeros(BUF_SHAPE, dtype=jnp.float32)

    def __call__(self, count, update_tensor):
        new_buf = buffer_pop_loop_forward(count, self.buf, update_tensor)
        self.buf = new_buf  # persistent buffer semantics
        return new_buf


if __name__ == "__main__":
    key = jax.random.PRNGKey(0)
    update_tensor = jax.random.normal(key, BUF_SHAPE, dtype=jnp.float32)
    count = 5

    model = BufferPopLoopModel()

    # First call: buf starts at zeros -> count * update
    out1 = jax.block_until_ready(model(count, update_tensor))
    expected1 = jnp.float32(count) * update_tensor
    assert out1.shape == BUF_SHAPE and out1.dtype == jnp.float32
    assert bool(jnp.allclose(out1, expected1, atol=1e-5, rtol=1e-5))

    # Second call: persistent buffer accumulates -> 2 * count * update
    out2 = jax.block_until_ready(model(count, update_tensor))
    expected2 = jnp.float32(2 * count) * update_tensor
    assert bool(jnp.allclose(out2, expected2, atol=1e-5, rtol=1e-5))

    print("KERNEL_OK")
</pallas_src>

<mosaic_0001>
module attributes {stable_mosaic.version = 11 : i64} {
  func.func @_buffer_loop_kernel(%arg0: memref<1xi32, #tpu.memory_space<smem>>, %arg1: memref<1x30xf32, #tpu.memory_space<vmem>>, %arg2: memref<1x30xf32, #tpu.memory_space<vmem>>, %arg3: memref<1x30xf32, #tpu.memory_space<vmem>>) attributes {dimension_semantics = [], scalar_prefetch = 0 : i64, scratch_operands = 0 : i64, tpu.core_type = #tpu.core_type<tc>} {
    %c0 = arith.constant 0 : index
    %0 = memref.load %arg0[%c0] : memref<1xi32, #tpu.memory_space<smem>>
    %c0_i32 = arith.constant 0 : i32
    %1 = arith.maxsi %0, %c0_i32 : i32
    %2 = arith.sitofp %1 : i32 to f32
    %c0_0 = arith.constant 0 : index
    %c0_1 = arith.constant 0 : index
    %3 = vector.load %arg1[%c0_0, %c0_1] : memref<1x30xf32, #tpu.memory_space<vmem>>, vector<1x30xf32>
    %c0_2 = arith.constant 0 : index
    %c0_3 = arith.constant 0 : index
    %4 = vector.load %arg2[%c0_2, %c0_3] : memref<1x30xf32, #tpu.memory_space<vmem>>, vector<1x30xf32>
    %5 = vector.broadcast %2 : f32 to vector<1x30xf32>
    %6 = arith.mulf %5, %4 : vector<1x30xf32>
    %7 = arith.addf %3, %6 : vector<1x30xf32>
    %c0_4 = arith.constant 0 : index
    %c0_5 = arith.constant 0 : index
    %8 = vector.load %arg3[%c0_4, %c0_5] : memref<1x30xf32, #tpu.memory_space<vmem>>, vector<1x30xf32>
    tpu.vector_store %arg3[%c0_4, %c0_5], %7 {strides = array<i32>} : memref<1x30xf32, #tpu.memory_space<vmem>>, vector<1x30xf32>,
    return
  }
}

</mosaic_0001>

<bundles_post_ra>
// kernel: _forward_impl.1
= control target key start
LH: loop header
LB: loop body
LE: loop exit
PB: predicated region body
PF: predicated region fallthrough
CT: control target
= control target key end

     0   :  { %vm24_vm0 = vcmask 237568   ;;  %s65_s0 = inlined_call_operand.<no memory space> [shape: s32[1], index: 0, kind: input, shape index: {}]   ;;  %s66_s2 = inlined_call_operand.vmem [shape: f32[1,30], index: 2, kind: input, shape index: {}]   ;;  %s67_s1 = inlined_call_operand.vmem [shape: f32[1,30], index: 1, kind: input, shape index: {}, may-alias: {1,3}]   ;;  %s68_s3 = inlined_call_operand.vmem [shape: f32[1,30], index: 3, kind: output, shape index: {}, may-alias: {1,3}]  }
   0x1   :  { %p16_p0 = scmp.gt.s32.totalorder %s65_s0, 0  ;;  %v20_v0 = vld [vmem:[%s66_s2] sm:$0x1] }
   0x2   :  { %v19_v1 = vld [vmem:[%s67_s1] sm:$0x1] }
   0x3   :  { %s70_s0 = smov (!%p16_p0, %s65_s0), 0 }
   0x4   :  { %s18_s16 = scvt.s32.f32 %s70_s0 }
   0x6   :  { %v21_v2 = vstv %s18_s16 }
   0x7   :  { %v22_v3 = vmul.f32 %v21_v2, %v20_v0 }
   0x9   :  { %v23_v4 = vadd.f32 %v22_v3, %v19_v1 }
   0xb   :  { %25 = vst.msk [vmem:[%s68_s3] sm:$0x1] %vm24_vm0, %v23_v4 }

</bundles_post_ra>
